<compile_context>
chip_gen: v7x
topology: tpu7x:2x2x1
jax: 0.10.0
libtpu: 0.0.40
codegen_flags: <defaults>
</compile_context>

<pallas_src>
import jax
import jax.numpy as jnp
from jax.experimental import pallas as pl
from jax.experimental.pallas import tpu as pltpu


# ---------------------------------------------------------------------------
# Fused Pallas kernel (single block; whole graph + weights resident in VMEM)
# ---------------------------------------------------------------------------
def fused_model3_kernel(
        # graph / node data
        i_row_ref, i_col_ref, j_col_ref, x_ref, pos_ref,
        # L1 msg net (Linear-Tanh-Linear-Tanh)
        l1m_w1, l1m_b1, l1m_w2, l1m_b2,
        # L1 aggr net (Linear-Tanh-Linear)
        l1a_w1, l1a_b1, l1a_w2, l1a_b2,
        # L2 msg net, first layer split along input dim: [x_i | x_j-x_i | pos_j-pos_i | ctx_i]
        l2m_w1_xi, l2m_w1_dx, l2m_w1_pd, l2m_w1_cx, l2m_b1, l2m_w2, l2m_b2,
        # L2 aggr net, first layer split along input dim: [x | aggr_out]
        l2a_w1_x, l2a_w1_ag, l2a_b1, l2a_w2, l2a_b2,
        # output
        out_ref):
    f32 = jnp.float32
    N = x_ref.shape[0]
    E = i_row_ref.shape[1]

    i_row = i_row_ref[...]            # [1, E] int32 : aggregation index i per edge
    i_col = i_col_ref[...]            # [E, 1] int32
    j_col = j_col_ref[...]            # [E, 1] int32

    # One-hot scatter / gather matrices built in-kernel (no [N,E] HBM traffic).
    node_ids_ne = jax.lax.broadcasted_iota(jnp.int32, (N, E), 0)   # [N, E] row = node id
    node_ids_en = jax.lax.broadcasted_iota(jnp.int32, (E, N), 1)   # [E, N] col = node id
    adj_i = (node_ids_ne == i_row).astype(f32)   # [N, E] scatter: edge e -> node i(e)
    sel_i = (node_ids_en == i_col).astype(f32)   # [E, N] gather node i per edge
    sel_j = (node_ids_en == j_col).astype(f32)   # [E, N] gather node j per edge
    sel_d = sel_j - sel_i                        # gathers (v_j - v_i) in one matmul

    # Inverse in-degree, computed once and folded into the scatter matrix, so the
    # mean aggregation of each layer is a single MXU matmul.
    deg = jnp.sum(adj_i, axis=1, keepdims=True)          # [N, 1]
    inv_deg = 1.0 / jnp.maximum(deg, 1.0)                # exact; empty segments -> 0
    adj_mean = adj_i * inv_deg                           # [N, E]

    x = x_ref[...]
    pos = pos_ref[...]

    def dot(a, b):
        return jnp.dot(a, b, preferred_element_type=f32)

    # ----- L1: EdgeConvGeomLayer --------------------------------------------
    pos_diff = dot(sel_d, pos)                                           # [E, 2] = pos_j - pos_i
    h1 = jnp.tanh(dot(pos_diff, l1m_w1[...]) + l1m_b1[...])
    msg1 = jnp.tanh(dot(h1, l1m_w2[...]) + l1m_b2[...])                  # [E, H1]
    agg1 = dot(adj_mean, msg1)                                           # [N, H1] mean aggregation
    ctx = dot(jnp.tanh(dot(agg1, l1a_w1[...]) + l1a_b1[...]),
              l1a_w2[...]) + l1a_b2[...]                                 # [N, C]

    # ----- L2: EdgeConvWithContext ------------------------------------------
    x_i = dot(sel_i, x)                                                  # [E, F]
    x_d = dot(sel_d, x)                                                  # [E, F] = x_j - x_i
    ctx_i = dot(sel_i, ctx)                                              # [E, C]
    # split-weight form of msg_net(cat([x_i, x_j-x_i, pos_j-pos_i, ctx_i]))
    pre = (dot(x_i, l2m_w1_xi[...]) + dot(x_d, l2m_w1_dx[...])
           + dot(pos_diff, l2m_w1_pd[...]) + dot(ctx_i, l2m_w1_cx[...]) + l2m_b1[...])
    msg2 = jnp.tanh(dot(jnp.tanh(pre), l2m_w2[...]) + l2m_b2[...])       # [E, H2]
    agg2 = dot(adj_mean, msg2)                                           # [N, H2]
    # split-weight form of aggr_net(cat([x, aggr_out]))
    pre2 = dot(x, l2a_w1_x[...]) + dot(agg2, l2a_w1_ag[...]) + l2a_b1[...]
    out_ref[...] = dot(jnp.tanh(pre2), l2a_w2[...]) + l2a_b2[...]        # [N, out]


# ---------------------------------------------------------------------------
# Model3 forward (wrapper: only index reshapes + static weight splitting)
# ---------------------------------------------------------------------------
def model3_forward(x, edge_index, pos, p):
    N, F = x.shape
    E = edge_index.shape[1]
    pos_dim = pos.shape[1]
    out_dim = p['l2a_w2'].shape[1]

    # flow='target_to_source': i = edge_index[0] (aggregation index), j = edge_index[1]
    i_idx = edge_index[0].astype(jnp.int32)
    j_idx = edge_index[1].astype(jnp.int32)
    i_row = i_idx.reshape(1, E)
    i_col = i_idx.reshape(E, 1)
    j_col = j_idx.reshape(E, 1)

    # Split the L2 first-layer weights along their input dim once (tiny static slices)
    # so the kernel never concatenates lane-narrow tiles.
    w1 = p['l2m_w1']
    l2m_w1_xi = w1[:F]
    l2m_w1_dx = w1[F:2 * F]
    l2m_w1_pd = w1[2 * F:2 * F + pos_dim]
    l2m_w1_cx = w1[2 * F + pos_dim:]
    wa1 = p['l2a_w1']
    l2a_w1_x = wa1[:F]
    l2a_w1_ag = wa1[F:]

    args = (i_row, i_col, j_col,
            x.astype(jnp.float32), pos.astype(jnp.float32),
            p['l1m_w1'], p['l1m_b1'], p['l1m_w2'], p['l1m_b2'],
            p['l1a_w1'], p['l1a_b1'], p['l1a_w2'], p['l1a_b2'],
            l2m_w1_xi, l2m_w1_dx, l2m_w1_pd, l2m_w1_cx,
            p['l2m_b1'], p['l2m_w2'], p['l2m_b2'],
            l2a_w1_x, l2a_w1_ag, p['l2a_b1'], p['l2a_w2'], p['l2a_b2'])

    # TODO(synk): if many graphs are processed, add a leading graph axis as a
    # "parallel" grid dimension (uses both v7x TensorCores) and tile E if it grows.
    return pl.pallas_call(
        fused_model3_kernel,
        out_shape=jax.ShapeDtypeStruct((N, out_dim), jnp.float32),
        in_specs=[pl.BlockSpec(memory_space=pltpu.MemorySpace.VMEM) for _ in args],
        out_specs=pl.BlockSpec(memory_space=pltpu.MemorySpace.VMEM),
    )(*args)


# ---------------------------------------------------------------------------
# Pure-JAX reference (independent of the kernel, uses segment_sum)
# ---------------------------------------------------------------------------
def _mlp2_ref(h, w1, b1, w2, b2, final_tanh):
    h = jnp.tanh(h @ w1 + b1)
    h = h @ w2 + b2
    return jnp.tanh(h) if final_tanh else h


def model3_reference(x, edge_index, pos, p):
    N, _ = x.shape
    E = edge_index.shape[1]
    i_idx, j_idx = edge_index[0], edge_index[1]
    posdiff = pos[j_idx] - pos[i_idx]

    def seg_mean(msg):
        s = jax.ops.segment_sum(msg, i_idx, num_segments=N)
        c = jax.ops.segment_sum(jnp.ones((E,), jnp.float32), i_idx, num_segments=N)
        return s / jnp.maximum(c, 1.0)[:, None]

    msg1 = _mlp2_ref(posdiff, p['l1m_w1'], p['l1m_b1'], p['l1m_w2'], p['l1m_b2'], True)
    ctx = _mlp2_ref(seg_mean(msg1), p['l1a_w1'], p['l1a_b1'], p['l1a_w2'], p['l1a_b2'], False)

    xi, xj, ctxi = x[i_idx], x[j_idx], ctx[i_idx]
    inp = jnp.concatenate([xi, xj - xi, posdiff, ctxi], axis=1)
    msg2 = _mlp2_ref(inp, p['l2m_w1'], p['l2m_b1'], p['l2m_w2'], p['l2m_b2'], True)
    inp2 = jnp.concatenate([x, seg_mean(msg2)], axis=1)
    return _mlp2_ref(inp2, p['l2a_w1'], p['l2a_b1'], p['l2a_w2'], p['l2a_b2'], False)


# ---------------------------------------------------------------------------
# Deterministic parameter init
# ---------------------------------------------------------------------------
def init_params(key, F, pos_dim=2, H1=16, C=8, H2=16, out_dim=4):
    def lin(k, din, dout):
        k1, k2 = jax.random.split(k)
        w = jax.random.normal(k1, (din, dout), jnp.float32) / jnp.sqrt(din)
        b = 0.1 * jax.random.normal(k2, (1, dout), jnp.float32)
        return w, b

    keys = jax.random.split(key, 8)
    p = {}
    p['l1m_w1'], p['l1m_b1'] = lin(keys[0], pos_dim, H1)
    p['l1m_w2'], p['l1m_b2'] = lin(keys[1], H1, H1)
    p['l1a_w1'], p['l1a_b1'] = lin(keys[2], H1, H1)
    p['l1a_w2'], p['l1a_b2'] = lin(keys[3], H1, C)
    d2 = F + F + pos_dim + C
    p['l2m_w1'], p['l2m_b1'] = lin(keys[4], d2, H2)
    p['l2m_w2'], p['l2m_b2'] = lin(keys[5], H2, H2)
    p['l2a_w1'], p['l2a_b1'] = lin(keys[6], F + H2, H2)
    p['l2a_w2'], p['l2a_b2'] = lin(keys[7], H2, out_dim)
    return p


if __name__ == "__main__":
    key = jax.random.PRNGKey(0)
    k_x, k_pos, k_edge, k_par = jax.random.split(key, 4)

    N, E, F = 16, 48, 4
    x = jax.random.normal(k_x, (N, F), jnp.float32)
    pos = jax.random.normal(k_pos, (N, 2), jnp.float32)
    edge_index = jax.random.randint(k_edge, (2, E), 0, N, dtype=jnp.int32)

    params = init_params(k_par, F)

    out = model3_forward(x, edge_index, pos, params)
    out = jax.block_until_ready(out)

    ref = model3_reference(x, edge_index, pos, params)
    assert out.shape == (N, 4)
    assert jnp.allclose(out, ref, atol=1e-4, rtol=1e-4), "Pallas output mismatch vs reference"

    print("KERNEL_OK")
</pallas_src>

<mosaic_0001>
module attributes {stable_mosaic.version = 11 : i64} {
  func.func @fused_model3_kernel(%arg0: memref<1x48xi32, #tpu.memory_space<vmem>>, %arg1: memref<48x1xi32, #tpu.memory_space<vmem>>, %arg2: memref<48x1xi32, #tpu.memory_space<vmem>>, %arg3: memref<16x4xf32, #tpu.memory_space<vmem>>, %arg4: memref<16x2xf32, #tpu.memory_space<vmem>>, %arg5: memref<2x16xf32, #tpu.memory_space<vmem>>, %arg6: memref<1x16xf32, #tpu.memory_space<vmem>>, %arg7: memref<16x16xf32, #tpu.memory_space<vmem>>, %arg8: memref<1x16xf32, #tpu.memory_space<vmem>>, %arg9: memref<16x16xf32, #tpu.memory_space<vmem>>, %arg10: memref<1x16xf32, #tpu.memory_space<vmem>>, %arg11: memref<16x8xf32, #tpu.memory_space<vmem>>, %arg12: memref<1x8xf32, #tpu.memory_space<vmem>>, %arg13: memref<4x16xf32, #tpu.memory_space<vmem>>, %arg14: memref<4x16xf32, #tpu.memory_space<vmem>>, %arg15: memref<2x16xf32, #tpu.memory_space<vmem>>, %arg16: memref<8x16xf32, #tpu.memory_space<vmem>>, %arg17: memref<1x16xf32, #tpu.memory_space<vmem>>, %arg18: memref<16x16xf32, #tpu.memory_space<vmem>>, %arg19: memref<1x16xf32, #tpu.memory_space<vmem>>, %arg20: memref<4x16xf32, #tpu.memory_space<vmem>>, %arg21: memref<16x16xf32, #tpu.memory_space<vmem>>, %arg22: memref<1x16xf32, #tpu.memory_space<vmem>>, %arg23: memref<16x4xf32, #tpu.memory_space<vmem>>, %arg24: memref<1x4xf32, #tpu.memory_space<vmem>>, %arg25: memref<16x4xf32, #tpu.memory_space<vmem>>) attributes {dimension_semantics = [], scalar_prefetch = 0 : i64, scratch_operands = 0 : i64, tpu.core_type = #tpu.core_type<tc>} {
    %c0 = arith.constant 0 : index
    %c0_0 = arith.constant 0 : index
    %0 = vector.load %arg0[%c0, %c0_0] : memref<1x48xi32, #tpu.memory_space<vmem>>, vector<1x48xi32>
    %c0_1 = arith.constant 0 : index
    %c0_2 = arith.constant 0 : index
    %1 = vector.load %arg1[%c0_1, %c0_2] : memref<48x1xi32, #tpu.memory_space<vmem>>, vector<48x1xi32>
    %c0_3 = arith.constant 0 : index
    %c0_4 = arith.constant 0 : index
    %2 = vector.load %arg2[%c0_3, %c0_4] : memref<48x1xi32, #tpu.memory_space<vmem>>, vector<48x1xi32>
    %3 = tpu.iota {dimensions = array<i32: 0>} : vector<16x48xi32>
    %4 = tpu.iota {dimensions = array<i32: 1>} : vector<48x16xi32>
    %5 = vector.broadcast %0 : vector<1x48xi32> to vector<16x48xi32>
    %6 = arith.cmpi eq, %3, %5 : vector<16x48xi32>
    %7 = arith.extui %6 : vector<16x48xi1> to vector<16x48xi32>
    %8 = arith.sitofp %7 : vector<16x48xi32> to vector<16x48xf32>
    %9 = vector.broadcast %1 : vector<48x1xi32> to vector<48x16xi32>
    %10 = arith.cmpi eq, %4, %9 : vector<48x16xi32>
    %11 = arith.extui %10 : vector<48x16xi1> to vector<48x16xi32>
    %12 = arith.sitofp %11 : vector<48x16xi32> to vector<48x16xf32>
    %13 = vector.broadcast %2 : vector<48x1xi32> to vector<48x16xi32>
    %14 = arith.cmpi eq, %4, %13 : vector<48x16xi32>
    %15 = arith.extui %14 : vector<48x16xi1> to vector<48x16xi32>
    %16 = arith.sitofp %15 : vector<48x16xi32> to vector<48x16xf32>
    %17 = arith.subf %16, %12 : vector<48x16xf32>
    %cst = arith.constant dense<0.000000e+00> : vector<16xf32>
    %18 = vector.multi_reduction <add>, %8, %cst [1] : vector<16x48xf32> to vector<16xf32>
    %19 = vector.shape_cast %18 : vector<16xf32> to vector<16x1xf32>
    %cst_5 = arith.constant 1.000000e+00 : f32
    %20 = vector.broadcast %cst_5 : f32 to vector<16x1xf32>
    %21 = arith.maximumf %19, %20 : vector<16x1xf32>
    %cst_6 = arith.constant 1.000000e+00 : f32
    %22 = vector.broadcast %cst_6 : f32 to vector<16x1xf32>
    %23 = arith.divf %22, %21 : vector<16x1xf32>
    %24 = vector.broadcast %23 : vector<16x1xf32> to vector<16x48xf32>
    %25 = arith.mulf %8, %24 : vector<16x48xf32>
    %c0_7 = arith.constant 0 : index
    %c0_8 = arith.constant 0 : index
    %26 = vector.load %arg3[%c0_7, %c0_8] : memref<16x4xf32, #tpu.memory_space<vmem>>, vector<16x4xf32>
    %c0_9 = arith.constant 0 : index
    %c0_10 = arith.constant 0 : index
    %27 = vector.load %arg4[%c0_9, %c0_10] : memref<16x2xf32, #tpu.memory_space<vmem>>, vector<16x2xf32>
    %cst_11 = arith.constant dense<0.000000e+00> : vector<48x2xf32>
    %28 = tpu.matmul %17, %27, %cst_11 {dimension_numbers = #tpu.dot_dimension_numbers<[1], [0], [0], [1], [0, 0, 1, 1], [], []>} : vector<48x16xf32>, vector<16x2xf32>, vector<48x2xf32> -> vector<48x2xf32>
    %c0_12 = arith.constant 0 : index
    %c0_13 = arith.constant 0 : index
    %29 = vector.load %arg5[%c0_12, %c0_13] : memref<2x16xf32, #tpu.memory_space<vmem>>, vector<2x16xf32>
    %cst_14 = arith.constant dense<0.000000e+00> : vector<48x16xf32>
    %30 = tpu.matmul %28, %29, %cst_14 {dimension_numbers = #tpu.dot_dimension_numbers<[1], [0], [0], [1], [0, 0, 1, 1], [], []>} : vector<48x2xf32>, vector<2x16xf32>, vector<48x16xf32> -> vector<48x16xf32>
    %c0_15 = arith.constant 0 : index
    %c0_16 = arith.constant 0 : index
    %31 = vector.load %arg6[%c0_15, %c0_16] : memref<1x16xf32, #tpu.memory_space<vmem>>, vector<1x16xf32>
    %32 = vector.broadcast %31 : vector<1x16xf32> to vector<48x16xf32>
    %33 = arith.addf %30, %32 : vector<48x16xf32>
    %34 = math.tanh %33 : vector<48x16xf32>
    %c0_17 = arith.constant 0 : index
    %c0_18 = arith.constant 0 : index
    %35 = vector.load %arg7[%c0_17, %c0_18] : memref<16x16xf32, #tpu.memory_space<vmem>>, vector<16x16xf32>
    %cst_19 = arith.constant dense<0.000000e+00> : vector<48x16xf32>
    %36 = tpu.matmul %34, %35, %cst_19 {dimension_numbers = #tpu.dot_dimension_numbers<[1], [0], [0], [1], [0, 0, 1, 1], [], []>} : vector<48x16xf32>, vector<16x16xf32>, vector<48x16xf32> -> vector<48x16xf32>
    %c0_20 = arith.constant 0 : index
    %c0_21 = arith.constant 0 : index
    %37 = vector.load %arg8[%c0_20, %c0_21] : memref<1x16xf32, #tpu.memory_space<vmem>>, vector<1x16xf32>
    %38 = vector.broadcast %37 : vector<1x16xf32> to vector<48x16xf32>
    %39 = arith.addf %36, %38 : vector<48x16xf32>
    %40 = math.tanh %39 : vector<48x16xf32>
    %cst_22 = arith.constant dense<0.000000e+00> : vector<16x16xf32>
    %41 = tpu.matmul %25, %40, %cst_22 {dimension_numbers = #tpu.dot_dimension_numbers<[1], [0], [0], [1], [0, 0, 1, 1], [], []>} : vector<16x48xf32>, vector<48x16xf32>, vector<16x16xf32> -> vector<16x16xf32>
    %c0_23 = arith.constant 0 : index
    %c0_24 = arith.constant 0 : index
    %42 = vector.load %arg9[%c0_23, %c0_24] : memref<16x16xf32, #tpu.memory_space<vmem>>, vector<16x16xf32>
    %cst_25 = arith.constant dense<0.000000e+00> : vector<16x16xf32>
    %43 = tpu.matmul %41, %42, %cst_25 {dimension_numbers = #tpu.dot_dimension_numbers<[1], [0], [0], [1], [0, 0, 1, 1], [], []>} : vector<16x16xf32>, vector<16x16xf32>, vector<16x16xf32> -> vector<16x16xf32>
    %c0_26 = arith.constant 0 : index
    %c0_27 = arith.constant 0 : index
    %44 = vector.load %arg10[%c0_26, %c0_27] : memref<1x16xf32, #tpu.memory_space<vmem>>, vector<1x16xf32>
    %45 = vector.broadcast %44 : vector<1x16xf32> to vector<16x16xf32>
    %46 = arith.addf %43, %45 : vector<16x16xf32>
    %47 = math.tanh %46 : vector<16x16xf32>
    %c0_28 = arith.constant 0 : index
    %c0_29 = arith.constant 0 : index
    %48 = vector.load %arg11[%c0_28, %c0_29] : memref<16x8xf32, #tpu.memory_space<vmem>>, vector<16x8xf32>
    %cst_30 = arith.constant dense<0.000000e+00> : vector<16x8xf32>
    %49 = tpu.matmul %47, %48, %cst_30 {dimension_numbers = #tpu.dot_dimension_numbers<[1], [0], [0], [1], [0, 0, 1, 1], [], []>} : vector<16x16xf32>, vector<16x8xf32>, vector<16x8xf32> -> vector<16x8xf32>
    %c0_31 = arith.constant 0 : index
    %c0_32 = arith.constant 0 : index
    %50 = vector.load %arg12[%c0_31, %c0_32] : memref<1x8xf32, #tpu.memory_space<vmem>>, vector<1x8xf32>
    %51 = vector.broadcast %50 : vector<1x8xf32> to vector<16x8xf32>
    %52 = arith.addf %49, %51 : vector<16x8xf32>
    %cst_33 = arith.constant dense<0.000000e+00> : vector<48x4xf32>
    %53 = tpu.matmul %12, %26, %cst_33 {dimension_numbers = #tpu.dot_dimension_numbers<[1], [0], [0], [1], [0, 0, 1, 1], [], []>} : vector<48x16xf32>, vector<16x4xf32>, vector<48x4xf32> -> vector<48x4xf32>
    %cst_34 = arith.constant dense<0.000000e+00> : vector<48x4xf32>
    %54 = tpu.matmul %17, %26, %cst_34 {dimension_numbers = #tpu.dot_dimension_numbers<[1], [0], [0], [1], [0, 0, 1, 1], [], []>} : vector<48x16xf32>, vector<16x4xf32>, vector<48x4xf32> -> vector<48x4xf32>
    %cst_35 = arith.constant dense<0.000000e+00> : vector<48x8xf32>
    %55 = tpu.matmul %12, %52, %cst_35 {dimension_numbers = #tpu.dot_dimension_numbers<[1], [0], [0], [1], [0, 0, 1, 1], [], []>} : vector<48x16xf32>, vector<16x8xf32>, vector<48x8xf32> -> vector<48x8xf32>
    %c0_36 = arith.constant 0 : index
    %c0_37 = arith.constant 0 : index
    %56 = vector.load %arg13[%c0_36, %c0_37] : memref<4x16xf32, #tpu.memory_space<vmem>>, vector<4x16xf32>
    %cst_38 = arith.constant dense<0.000000e+00> : vector<48x16xf32>
    %57 = tpu.matmul %53, %56, %cst_38 {dimension_numbers = #tpu.dot_dimension_numbers<[1], [0], [0], [1], [0, 0, 1, 1], [], []>} : vector<48x4xf32>, vector<4x16xf32>, vector<48x16xf32> -> vector<48x16xf32>
    %c0_39 = arith.constant 0 : index
    %c0_40 = arith.constant 0 : index
    %58 = vector.load %arg14[%c0_39, %c0_40] : memref<4x16xf32, #tpu.memory_space<vmem>>, vector<4x16xf32>
    %cst_41 = arith.constant dense<0.000000e+00> : vector<48x16xf32>
    %59 = tpu.matmul %54, %58, %cst_41 {dimension_numbers = #tpu.dot_dimension_numbers<[1], [0], [0], [1], [0, 0, 1, 1], [], []>} : vector<48x4xf32>, vector<4x16xf32>, vector<48x16xf32> -> vector<48x16xf32>
    %60 = arith.addf %57, %59 : vector<48x16xf32>
    %c0_42 = arith.constant 0 : index
    %c0_43 = arith.constant 0 : index
    %61 = vector.load %arg15[%c0_42, %c0_43] : memref<2x16xf32, #tpu.memory_space<vmem>>, vector<2x16xf32>
    %cst_44 = arith.constant dense<0.000000e+00> : vector<48x16xf32>
    %62 = tpu.matmul %28, %61, %cst_44 {dimension_numbers = #tpu.dot_dimension_numbers<[1], [0], [0], [1], [0, 0, 1, 1], [], []>} : vector<48x2xf32>, vector<2x16xf32>, vector<48x16xf32> -> vector<48x16xf32>
    %63 = arith.addf %60, %62 : vector<48x16xf32>
    %c0_45 = arith.constant 0 : index
    %c0_46 = arith.constant 0 : index
    %64 = vector.load %arg16[%c0_45, %c0_46] : memref<8x16xf32, #tpu.memory_space<vmem>>, vector<8x16xf32>
    %cst_47 = arith.constant dense<0.000000e+00> : vector<48x16xf32>
    %65 = tpu.matmul %55, %64, %cst_47 {dimension_numbers = #tpu.dot_dimension_numbers<[1], [0], [0], [1], [0, 0, 1, 1], [], []>} : vector<48x8xf32>, vector<8x16xf32>, vector<48x16xf32> -> vector<48x16xf32>
    %66 = arith.addf %63, %65 : vector<48x16xf32>
    %c0_48 = arith.constant 0 : index
    %c0_49 = arith.constant 0 : index
    %67 = vector.load %arg17[%c0_48, %c0_49] : memref<1x16xf32, #tpu.memory_space<vmem>>, vector<1x16xf32>
    %68 = vector.broadcast %67 : vector<1x16xf32> to vector<48x16xf32>
    %69 = arith.addf %66, %68 : vector<48x16xf32>
    %70 = math.tanh %69 : vector<48x16xf32>
    %c0_50 = arith.constant 0 : index
    %c0_51 = arith.constant 0 : index
    %71 = vector.load %arg18[%c0_50, %c0_51] : memref<16x16xf32, #tpu.memory_space<vmem>>, vector<16x16xf32>
    %cst_52 = arith.constant dense<0.000000e+00> : vector<48x16xf32>
    %72 = tpu.matmul %70, %71, %cst_52 {dimension_numbers = #tpu.dot_dimension_numbers<[1], [0], [0], [1], [0, 0, 1, 1], [], []>} : vector<48x16xf32>, vector<16x16xf32>, vector<48x16xf32> -> vector<48x16xf32>
    %c0_53 = arith.constant 0 : index
    %c0_54 = arith.constant 0 : index
    %73 = vector.load %arg19[%c0_53, %c0_54] : memref<1x16xf32, #tpu.memory_space<vmem>>, vector<1x16xf32>
    %74 = vector.broadcast %73 : vector<1x16xf32> to vector<48x16xf32>
    %75 = arith.addf %72, %74 : vector<48x16xf32>
    %76 = math.tanh %75 : vector<48x16xf32>
    %cst_55 = arith.constant dense<0.000000e+00> : vector<16x16xf32>
    %77 = tpu.matmul %25, %76, %cst_55 {dimension_numbers = #tpu.dot_dimension_numbers<[1], [0], [0], [1], [0, 0, 1, 1], [], []>} : vector<16x48xf32>, vector<48x16xf32>, vector<16x16xf32> -> vector<16x16xf32>
    %c0_56 = arith.constant 0 : index
    %c0_57 = arith.constant 0 : index
    %78 = vector.load %arg20[%c0_56, %c0_57] : memref<4x16xf32, #tpu.memory_space<vmem>>, vector<4x16xf32>
    %cst_58 = arith.constant dense<0.000000e+00> : vector<16x16xf32>
    %79 = tpu.matmul %26, %78, %cst_58 {dimension_numbers = #tpu.dot_dimension_numbers<[1], [0], [0], [1], [0, 0, 1, 1], [], []>} : vector<16x4xf32>, vector<4x16xf32>, vector<16x16xf32> -> vector<16x16xf32>
    %c0_59 = arith.constant 0 : index
    %c0_60 = arith.constant 0 : index
    %80 = vector.load %arg21[%c0_59, %c0_60] : memref<16x16xf32, #tpu.memory_space<vmem>>, vector<16x16xf32>
    %cst_61 = arith.constant dense<0.000000e+00> : vector<16x16xf32>
    %81 = tpu.matmul %77, %80, %cst_61 {dimension_numbers = #tpu.dot_dimension_numbers<[1], [0], [0], [1], [0, 0, 1, 1], [], []>} : vector<16x16xf32>, vector<16x16xf32>, vector<16x16xf32> -> vector<16x16xf32>
    %82 = arith.addf %79, %81 : vector<16x16xf32>
    %c0_62 = arith.constant 0 : index
    %c0_63 = arith.constant 0 : index
    %83 = vector.load %arg22[%c0_62, %c0_63] : memref<1x16xf32, #tpu.memory_space<vmem>>, vector<1x16xf32>
    %84 = vector.broadcast %83 : vector<1x16xf32> to vector<16x16xf32>
    %85 = arith.addf %82, %84 : vector<16x16xf32>
    %86 = math.tanh %85 : vector<16x16xf32>
    %c0_64 = arith.constant 0 : index
    %c0_65 = arith.constant 0 : index
    %87 = vector.load %arg23[%c0_64, %c0_65] : memref<16x4xf32, #tpu.memory_space<vmem>>, vector<16x4xf32>
    %cst_66 = arith.constant dense<0.000000e+00> : vector<16x4xf32>
    %88 = tpu.matmul %86, %87, %cst_66 {dimension_numbers = #tpu.dot_dimension_numbers<[1], [0], [0], [1], [0, 0, 1, 1], [], []>} : vector<16x16xf32>, vector<16x4xf32>, vector<16x4xf32> -> vector<16x4xf32>
    %c0_67 = arith.constant 0 : index
    %c0_68 = arith.constant 0 : index
    %89 = vector.load %arg24[%c0_67, %c0_68] : memref<1x4xf32, #tpu.memory_space<vmem>>, vector<1x4xf32>
    %90 = vector.broadcast %89 : vector<1x4xf32> to vector<16x4xf32>
    %91 = arith.addf %88, %90 : vector<16x4xf32>
    %c0_69 = arith.constant 0 : index
    %c0_70 = arith.constant 0 : index
    %92 = vector.load %arg25[%c0_69, %c0_70] : memref<16x4xf32, #tpu.memory_space<vmem>>, vector<16x4xf32>
    tpu.vector_store %arg25[%c0_69, %c0_70], %91 {strides = array<i32>} : memref<16x4xf32, #tpu.memory_space<vmem>>, vector<16x4xf32>,
    return
  }
}

</mosaic_0001>

<bundles_post_ra>
// kernel: tpu_custom_call.1
= control target key start
LH: loop header
LB: loop body
LE: loop exit
PB: predicated region body
PF: predicated region fallthrough
CT: control target
= control target key end

     0   :  { %v2674_v0 = vmov 0   ;;  %v93_v16 = vlaneseq  ;;  %vm205_vm4 = vcmask 130048   ;;  %v2675_v22 = vmov 0.0   ;;  %s3161_s1 = inlined_call_operand.vmem [shape: s32[48,1], index: 1, kind: input, shape index: {}]   ;;  %s3162_s2 = inlined_call_operand.vmem [shape: s32[48,1], index: 2, kind: input, shape index: {}]   ;;  %s3163_s4 = inlined_call_operand.vmem [shape: f32[16,2], index: 4, kind: input, shape index: {}]   ;;  %s3164_s5 = inlined_call_operand.vmem [shape: f32[2,16], index: 5, kind: input, shape index: {}]   ;;  %s3165_s7 = inlined_call_operand.vmem [shape: f32[16,16], index: 7, kind: input, shape index: {}]   ;;  %s3166_s0 = inlined_call_operand.vmem [shape: s32[1,48], index: 0, kind: input, shape index: {}]   ;;  %s3167_s6 = inlined_call_operand.vmem [shape: f32[1,16], index: 6, kind: input, shape index: {}]   ;;  %s3168_s9 = inlined_call_operand.vmem [shape: f32[16,16], index: 9, kind: input, shape index: {}]   ;;  %s3169_s8 = inlined_call_operand.vmem [shape: f32[1,16], index: 8, kind: input, shape index: {}]   ;;  %s3170_s3 = inlined_call_operand.vmem [shape: f32[16,4], index: 3, kind: input, shape index: {}]   ;;  %s3171_s11 = inlined_call_operand.vmem [shape: f32[16,8], index: 11, kind: input, shape index: {}]   ;;  %s3172_s10 = inlined_call_operand.vmem [shape: f32[1,16], index: 10, kind: input, shape index: {}]   ;;  %s3173_s14 = inlined_call_operand.vmem [shape: f32[4,16], index: 14, kind: input, shape index: {}]   ;;  %s3174_s13 = inlined_call_operand.vmem [shape: f32[4,16], index: 13, kind: input, shape index: {}]   ;;  %s3175_s12 = inlined_call_operand.vmem [shape: f32[1,8], index: 12, kind: input, shape index: {}]   ;;  %s3176_s15 = inlined_call_operand.vmem [shape: f32[2,16], index: 15, kind: input, shape index: {}]   ;;  %s3177_s16 = inlined_call_operand.vmem [shape: f32[8,16], index: 16, kind: input, shape index: {}]   ;;  %s3178_s18 = inlined_call_operand.vmem [shape: f32[16,16], index: 18, kind: input, shape index: {}]   ;;  %s3179_s17 = inlined_call_operand.vmem [shape: f32[1,16], index: 17, kind: input, shape index: {}]   ;;  %s3180_s19 = inlined_call_operand.vmem [shape: f32[1,16], index: 19, kind: input, shape index: {}]   ;;  %s3181_s21 = inlined_call_operand.vmem [shape: f32[16,16], index: 21, kind: input, shape index: {}]   ;;  %s3182_s20 = inlined_call_operand.vmem [shape: f32[4,16], index: 20, kind: input, shape index: {}]   ;;  %s3183_s23 = inlined_call_operand.vmem [shape: f32[16,4], index: 23, kind: input, shape index: {}]   ;;  %s3184_s22 = inlined_call_operand.vmem [shape: f32[1,16], index: 22, kind: input, shape index: {}]   ;;  %s3185_s24 = inlined_call_operand.vmem [shape: f32[1,4], index: 24, kind: input, shape index: {}]   ;;  %s3186_s25 = inlined_call_operand.vmem [shape: f32[16,4], index: 25, kind: output, shape index: {}]  }
   0x1   :  { %3193 = sst [smem:[#allocation2_spill]] %s3161_s1  ;;  %2613 = vset.pattern.permute.xlu1 %v2674_v0  ;;  %2612 = vset.pattern.permute.xlu0 %v2674_v0  ;;  %vm346_vm13 = vcmask 1041408   ;;  %vm327_vm14 = vcmask 15360   ;;  %vm186_vm15 = vcmask 392192  }
   0x2   :  { %3194 = sst [smem:[#allocation3_spill]] %s3162_s2  ;;  %v97_v17 = vand.u32 127, %v93_v16  ;;  %v94_v59 = vshrl.u32 %v93_v16, 7 }
   0x3   :  { %3195 = sst [smem:[#allocation4_spill]] %s3163_s4  ;;  %s3204_s2 = sld [smem:[#allocation3_spill]] }
   0x4   :  { %3196 = sst [smem:[#allocation5_spill]] %s3164_s5  ;;  %s3205_s28 = sld [smem:[#allocation4_spill]]  ;;  %v95_v61 = vadd.s32 8, %v94_v59 }
   0x5   :  { %3197 = sst [smem:[#allocation6_spill]] %s3165_s7 }
   0x6   :  { %3198 = sst [smem:[#allocation7_spill]] %s3166_s0 }
   0x7   :  { %3199 = sst [smem:[#allocation8_spill]] %s3167_s6  ;;  %s3203_s6 = sld [smem:[#allocation2_spill]] }
   0x8   :  { %3200 = sst [smem:[#allocation9_spill]] %s3168_s9  ;;  %s3206_s9 = sld [smem:[#allocation5_spill]] }
   0x9   :  { %3201 = sst [smem:[#allocation10_spill]] %s3169_s8  ;;  %v88_v3 = vld [vmem:[%s3204_s2 + $0x8] sm:$0xff]  ;;  %v87_v4 = vld [vmem:[%s3204_s2] sm:$0xff]  ;;  %v89_v8 = vld [vmem:[%s3204_s2 + $0x10] sm:$0xff]  ;;  %s3207_s8 = sld [smem:[#allocation6_spill]] }
   0xa   :  { %3202 = sst [smem:[#allocation11_spill]] %s3170_s3  ;;  %v203_v5 = vld [vmem:[%s3205_s28] sm:$0xff]  ;;  %v204_v6 = vld [vmem:[%s3205_s28 + $0x8] sm:$0xff]  ;;  %v90_v10 = vld [vmem:[%s3204_s2 + $0x18] sm:$0xff]  ;;  %s3208_s0 = sld [smem:[#allocation7_spill]] }
   0xb   :  { %v2526_v7 = vpack.c.bf16 %v204_v6, %v203_v5  ;;  %v91_v12 = vld [vmem:[%s3204_s2 + $0x20] sm:$0xff]  ;;  %v92_v14 = vld [vmem:[%s3204_s2 + $0x28] sm:$0xff]  ;;  %s3209_s4 = sld [smem:[#allocation8_spill]]  ;;  %s3210_s2 = sld [smem:[#allocation9_spill]] }
   0xc   :  { %s3211_s27 = sld [smem:[#allocation10_spill]]  ;;  %s3212_s28 = sld [smem:[#allocation11_spill]] }
   0xd   :  { %v82_v1 = vld [vmem:[%s3203_s6 + $0x8] sm:$0xff]  ;;  %v81_v2 = vld [vmem:[%s3203_s6] sm:$0xff]  ;;  %v83_v9 = vld [vmem:[%s3203_s6 + $0x10] sm:$0xff]  ;;  %2527 = vmatprep.subr.bf16.mxu0 %v2526_v7 }
   0xe   :  { %112 = vperm.xlu1 %2613, %v82_v1   ;;  %109 = vperm.xlu0 %2612, %v81_v2   ;;  %v84_v11 = vld [vmem:[%s3203_s6 + $0x18] sm:$0xff]  ;;  %v85_v13 = vld [vmem:[%s3203_s6 + $0x20] sm:$0xff]  ;;  %v86_v15 = vld [vmem:[%s3203_s6 + $0x28] sm:$0xff] }
   0xf   :  { %2529 = vmatpush3.bf16.msra.mxu0 %v2526_v7  ;;  %v319_v49 = vld [vmem:[%s3206_s9] sm:$0x3]  ;;  %v452_v57 = vld [vmem:[%s3207_s8 + $0x8] sm:$0xff] }
  0x10   :  { %2343 = vmatprep.subr.msk.mxu1 %vm346_vm13, %v319_v49  ;;  %v451_v56 = vld [vmem:[%s3207_s8] sm:$0xff] }
  0x11   :  { %2344 = vmatpush3.msk.msra.mxu1 %vm346_vm13, %v319_v49  ;;  %v2530_v58 = vpack.c.bf16 %v452_v57, %v451_v56  ;;  %v2104_v60 = vld [vmem:[%s3208_s0] ss:$0 sm:$0xff] }
  0x12   :  { %148 = vperm.xlu1 %2613, %v88_v3   ;;  %145 = vperm.xlu0 %2612, %v87_v4   ;;  %v2125_v2 = vld [vmem:[%s3209_s4] ss:$0 sm:$0xff] }
  0x13   :  { %2531 = vmatprep.subr.bf16.mxu1 %v2530_v58 }
  0x16   :  { %151 = vperm.xlu1 %2613, %v89_v8   ;;  %115 = vperm.xlu0 %2612, %v83_v9  }
  0x1a   :  { %154 = vperm.xlu1 %2613, %v90_v10   ;;  %118 = vperm.xlu0 %2612, %v84_v11  }
  0x1e   :  { %157 = vperm.xlu1 %2613, %v91_v12   ;;  %121 = vperm.xlu0 %2612, %v85_v13  }
  0x22   :  { %160 = vperm.xlu1 %2613, %v92_v14   ;;  %124 = vperm.xlu0 %2612, %v86_v15  }
  0x8d   :  { %v113_v18 = vpop.permute.xlu1 %112  ;;  %v110_v19 = vpop.permute.xlu0 %109 }
  0x8e   :  { %vm127_vm0 = vcmp.eq.s32.totalorder %v97_v17, %v113_v18  ;;  %vm126_vm1 = vcmp.eq.s32.totalorder %v97_v17, %v110_v19 }
  0x8f   :  { %v2850_v23 = vsel %vm127_vm0, 1.0, %v2675_v22  ;;  %v2853_v24 = vsel %vm126_vm1, 1.0, %v2675_v22  ;;  %vm102_vm0 = vcmp.eq.s32.totalorder %v94_v59, %v2104_v60  ;;  %vm103_vm1 = vcmp.eq.s32.totalorder %v95_v61, %v2104_v60 }
  0x90   :  { %v2105_v62 = vsel %vm102_vm0, 1.0, %v2675_v22  ;;  %v2945_v0 = vsel %vm103_vm1, 1.0, %v2675_v22 }
  0x91   :  { %v149_v20 = vpop.permute.xlu1 %148  ;;  %v146_v21 = vpop.permute.xlu0 %145  ;;  %v187_v63 = vsel %vm186_vm15, %v2105_v62, 0.0  ;;  %v190_v1 = vsel %vm186_vm15, %v2945_v0, 0.0 }
  0x92   :  { %vm163_vm2 = vcmp.eq.s32.totalorder %v97_v17, %v149_v20  ;;  %vm162_vm3 = vcmp.eq.s32.totalorder %v97_v17, %v146_v21  ;;  %188 = vadd.xlane.f32.xlu0 %v187_v63  ;;  %191 = vadd.xlane.f32.xlu1 %v190_v1 }
  0x93   :  { %v2114_v25 = vsel %vm163_vm2, 1.0, %v2675_v22  ;;  %v2113_v26 = vsel %vm162_vm3, 1.0, %v2675_v22  ;;  %vm1166_vm2 = vcmask 1043456   ;;  %vm1147_vm3 = vcmask 31744  }
  0x94   :  { %v2858_v27 = vsub.f32 %v2114_v25, %v2850_v23  ;;  %v2861_v28 = vsub.f32 %v2113_v26, %v2853_v24 }
  0x95   :  { %v152_v29 = vpop.permute.xlu1 %151  ;;  %v116_v30 = vpop.permute.xlu0 %115 }
  0x96   :  { %vm164_vm5 = vcmp.eq.s32.totalorder %v97_v17, %v152_v29  ;;  %vm128_vm6 = vcmp.eq.s32.totalorder %v97_v17, %v116_v30  ;;  %2334 = vmatprep.mubr.msk.f32.mxu0 %vm205_vm4, %v2861_v28  ;;  %v660_v29 = vld [vmem:[%s3210_s2] sm:$0xff]  ;;  %v661_v30 = vld [vmem:[%s3210_s2 + $0x8] sm:$0xff] }
  0x97   :  { %v2115_v31 = vsel %vm164_vm5, 1.0, %v2675_v22  ;;  %v2867_v32 = vsel %vm128_vm6, 1.0, %v2675_v22  ;;  %2335 = vmatmul.mubr.msk.f32.vlgmr.msra.gmra.mrb[0].mxu0 %vm205_vm4, %v2858_v27  ;;  %vm1487_vm5 = vcmask 64512  }
  0x98   :  { %v2872_v33 = vsub.f32 %v2115_v31, %v2867_v32  ;;  %v2546_v31 = vpack.c.bf16 %v661_v30, %v660_v29 }
  0x99   :  { %v155_v34 = vpop.permute.xlu1 %154  ;;  %v119_v35 = vpop.permute.xlu0 %118 }
  0x9a   :  { %vm165_vm7 = vcmp.eq.s32.totalorder %v97_v17, %v155_v34  ;;  %vm129_vm8 = vcmp.eq.s32.totalorder %v97_v17, %v119_v35  ;;  %2337 = vmatprep.mubr.msk.f32.mxu0 %vm205_vm4, %v2872_v33  ;;  %2547 = vmatprep.subr.bf16.mxu0 %v2546_v31  ;;  %v2133_v34 = vld [vmem:[%s3211_s27] ss:$0 sm:$0xff] }
  0x9b   :  { %v2116_v36 = vsel %vm165_vm7, 1.0, %v2675_v22  ;;  %v2878_v37 = vsel %vm129_vm8, 1.0, %v2675_v22  ;;  %2549 = vmatpush3.bf16.msra.mxu0 %v2546_v31 }
  0x9c   :  { %v2881_v38 = vsub.f32 %v2116_v36, %v2878_v37 }
  0x9d   :  { %v158_v39 = vpop.permute.xlu1 %157  ;;  %v122_v40 = vpop.permute.xlu0 %121 }
  0x9e   :  { %vm166_vm9 = vcmp.eq.s32.totalorder %v97_v17, %v158_v39  ;;  %vm130_vm10 = vcmp.eq.s32.totalorder %v97_v17, %v122_v40  ;;  %2338 = vmatmul.mubr.msk.f32.gmra.mrb[2].mxu0 %vm205_vm4, %v2881_v38 }
  0x9f   :  { %v2117_v41 = vsel %vm166_vm9, 1.0, %v2675_v22  ;;  %v2887_v42 = vsel %vm130_vm10, 1.0, %v2675_v22 }
  0xa0   :  { %v2890_v43 = vsub.f32 %v2117_v41, %v2887_v42 }
  0xa1   :  { %v161_v44 = vpop.permute.xlu1 %160  ;;  %v125_v45 = vpop.permute.xlu0 %124 }
  0xa2   :  { %vm167_vm11 = vcmp.eq.s32.totalorder %v97_v17, %v161_v44  ;;  %vm131_vm12 = vcmp.eq.s32.totalorder %v97_v17, %v125_v45  ;;  %2340 = vmatprep.mubr.msk.f32.mxu0 %vm205_vm4, %v2890_v43 }
  0xa3   :  { %v2118_v46 = vsel %vm167_vm11, 1.0, %v2675_v22  ;;  %v2896_v47 = vsel %vm131_vm12, 1.0, %v2675_v22 }
  0xa4   :  { %v2899_v48 = vsub.f32 %v2118_v46, %v2896_v47 }
  0xa6   :  { %2341 = vmatmul.mubr.msk.f32.gmra.mrb[4].mxu0 %vm205_vm4, %v2899_v48 }
 0x11f   :  { %v189_v21 = vpop.xlane.xlu0 %188  ;;  %v192_v49 = vpop.xlane.xlu1 %191 }
 0x120   :  { %v193_v22 = vmax.f32 %v189_v21, 1.0  ;;  %v194_v57 = vmax.f32 %v192_v49, 1.0  ;;  %v2142_v21 = vld [vmem:[%s3172_s10] ss:$0 sm:$0xff] }
 0x16a   :  { %v2908_v50 = vpop.f32.mrb[0].mxu0 }
 0x16b   :  { %v2910_v51 = vpop.f32.mrb[1].mxu0 }
 0x16c   :  { %2345 = vmatprep.mubr.msk.f32.mxu1 %vm327_vm14, %v2910_v51 }
 0x16d   :  { %2346 = vmatmul.mubr.msk.f32.vlgmr.msra.gmra.mrb[0].mxu1 %vm327_vm14, %v2908_v50 }
 0x16e   :  { %2533 = vmatpush3.bf16.msra.mxu1 %v2530_v58 }
 0x171   :  { %v2916_v52 = vpop.f32.mrb[2].mxu0 }
 0x172   :  { %v2918_v53 = vpop.f32.mrb[3].mxu0 }
 0x173   :  { %2348 = vmatprep.mubr.msk.f32.mxu1 %vm327_vm14, %v2918_v53 }
 0x174   :  { %2349 = vmatmul.mubr.msk.f32.gmra.mrb[2].mxu1 %vm327_vm14, %v2916_v52 }
 0x179   :  { %v2924_v54 = vpop.f32.mrb[4].mxu0 }
 0x17a   :  { %v2926_v55 = vpop.f32.mrb[5].mxu0 }
 0x17b   :  { %2351 = vmatprep.mubr.msk.f32.mxu1 %vm327_vm14, %v2926_v55 }
 0x17c   :  { %2352 = vmatmul.mubr.msk.f32.gmra.mrb[4].mxu1 %vm327_vm14, %v2924_v54 }
 0x240   :  { %v2347_v3 = vpop.f32.mrb[0].mxu1 }
 0x241   :  { %v422_v4 = vadd.f32 %v2347_v3, %v2125_v2  ;;  %v416_v5 = vpop.f32.mrb[1].mxu1 }
 0x242   :  { %v417_v6 = vadd.f32 %v2125_v2, %v416_v5  ;;  %v2974_v5 = vld [vmem:[%s3212_s28] sm:$0xff] }
 0x244   :  { %2614 = vtanh.f32 %v417_v6  ;;  %v2979_v6 = vld [vmem:[%s3212_s28 + $0x8] sm:$0xff] }
 0x245   :  { %2616 = vtanh.f32 %v422_v4 }
 0x247   :  { %v2350_v7 = vpop.f32.mrb[2].mxu1 }
 0x248   :  { %v432_v8 = vadd.f32 %v2350_v7, %v2125_v2  ;;  %v426_v9 = vpop.f32.mrb[3].mxu1 }
 0x249   :  { %v427_v10 = vadd.f32 %v2125_v2, %v426_v9 }
 0x24b   :  { %2618 = vtanh.f32 %v427_v10  ;;  %v2554_v10 = vpack.c.bf16 %v2979_v6, %v2974_v5 }
 0x24c   :  { %2620 = vtanh.f32 %v432_v8 }
 0x24e   :  { %v2615_v11 = vpop.eup %2614 }
 0x24f   :  { %v2617_v12 = vpop.eup %2616  ;;  %v2353_v13 = vpop.f32.mrb[4].mxu1  ;;  %2358 = vmatprep.mubr.msk.f32.mxu1 %vm205_vm4, %v2615_v11 }
 0x250   :  { %v442_v14 = vadd.f32 %v2353_v13, %v2125_v2  ;;  %v436_v15 = vpop.f32.mrb[5].mxu1  ;;  %2359 = vmatmul.mubr.msk.f32.vlgmr.msra.gmra.mrb[6].mxu1 %vm205_vm4, %v2617_v12 }
 0x251   :  { %v437_v16 = vadd.f32 %v2125_v2, %v436_v15 }
 0x253   :  { %2622 = vtanh.f32 %v437_v16 }
 0x254   :  { %2624 = vtanh.f32 %v442_v14 }
 0x255   :  { %v2619_v17 = vpop.eup %2618  ;;  %2626 = vrcp.f32 %v193_v22 }
 0x256   :  { %v2621_v18 = vpop.eup %2620  ;;  %2361 = vmatprep.mubr.msk.f32.mxu1 %vm205_vm4, %v2619_v17 }
 0x257   :  { %2362 = vmatmul.mubr.msk.f32.gmra.mrb[8].mxu1 %vm205_vm4, %v2621_v18 }
 0x25d   :  { %v2623_v19 = vpop.eup %2622 }
 0x25e   :  { %v2625_v20 = vpop.eup %2624  ;;  %2364 = vmatprep.mubr.msk.f32.mxu1 %vm205_vm4, %v2623_v19  ;;  %v753_v19 = vld [vmem:[%s3171_s11 + $0x8] sm:$0xff] }
 0x25f   :  { %2365 = vmatmul.mubr.msk.f32.gmra.mrb[10].mxu1 %vm205_vm4, %v2625_v20  ;;  %v2627_v25 = vpop.eup %2626 }
 0x260   :  { %v2958_v26 = vmul.f32 %v2627_v25, %v2105_v62 }
 0x262   :  { %2379 = vmatprep.mubr.msk.f32.mxu1 %vm186_vm15, %v2958_v26 }
 0x323   :  { %v2360_v35 = vpop.f32.mrb[6].mxu1 }
 0x324   :  { %v550_v36 = vadd.f32 %v2360_v35, %v2133_v34  ;;  %v544_v39 = vpop.f32.mrb[7].mxu1  ;;  %v1146_v35 = vld [vmem:[%s3173_s14] sm:$0xf] }
 0x325   :  { %v545_v40 = vadd.f32 %v2133_v34, %v544_v39 }
 0x326   :  { %2628 = vtanh.f32 %v550_v36 }
 0x327   :  { %2630 = vtanh.f32 %v545_v40 }
 0x32a   :  { %v2363_v41 = vpop.f32.mrb[8].mxu1 }
 0x32b   :  { %v560_v44 = vadd.f32 %v2363_v41, %v2133_v34  ;;  %v554_v45 = vpop.f32.mrb[9].mxu1  ;;  %v1381_v41 = vld [vmem:[%s3176_s15] sm:$0x3] }
 0x32c   :  { %v555_v46 = vadd.f32 %v2133_v34, %v554_v45 }
 0x32d   :  { %2632 = vtanh.f32 %v560_v44 }
 0x32e   :  { %2634 = vtanh.f32 %v555_v46 }
 0x32f   :  { %2636 = vrcp.f32 %v194_v57 }
 0x330   :  { %v2629_v56 = vpop.eup %2628 }
 0x331   :  { %v2631_v58 = vpop.eup %2630 }
 0x332   :  { %v2366_v59 = vpop.f32.mrb[10].mxu1  ;;  %v2534_v60 = vpack.c.bf16 %v2629_v56, %v2631_v58 }
 0x333   :  { %v570_v61 = vadd.f32 %v2366_v59, %v2133_v34  ;;  %v564_v62 = vpop.f32.mrb[11].mxu1 }
 0x334   :  { %v565_v63 = vadd.f32 %v2133_v34, %v564_v62  ;;  %2535 = vmatprep.subr.bf16.mxu1 %v2534_v60 }
 0x335   :  { %2638 = vtanh.f32 %v570_v61  ;;  %2537 = vmatpush3.bf16.msra.mxu1 %v2534_v60 }
 0x336   :  { %2640 = vtanh.f32 %v565_v63 }
 0x337   :  { %v2633_v1 = vpop.eup %2632 }
 0x338   :  { %v2635_v2 = vpop.eup %2634 }
 0x339   :  { %v2538_v3 = vpack.c.bf16 %v2633_v1, %v2635_v2  ;;  %v2637_v4 = vpop.eup %2636 }
 0x33a   :  { %v2984_v11 = vmul.f32 %v2637_v4, %v2945_v0 }
 0x33b   :  { %2539 = vmatprep.subr.bf16.mxu1 %v2538_v3 }
 0x33c   :  { %2541 = vmatpush3.bf16.msra.mxu1 %v2538_v3 }
 0x33f   :  { %v2639_v7 = vpop.eup %2638 }
 0x340   :  { %v2641_v8 = vpop.eup %2640 }
 0x341   :  { %v2542_v9 = vpack.c.bf16 %v2639_v7, %v2641_v8 }
 0x343   :  { %2543 = vmatprep.subr.bf16.mxu1 %v2542_v9 }
 0x344   :  { %2545 = vmatpush3.bf16.msra.mxu1 %v2542_v9 }
 0x345   :  { %2555 = vmatprep.subr.bf16.mxu1 %v2554_v10 }
 0x347   :  { %2380 = vmatmul.mubr.msk.f32.vlgmr.msra.gmra.mrb[12].mxu1 %vm186_vm15, %v2984_v11 }
 0x348   :  { %2557 = vmatpush3.bf16.msra.mxu1 %v2554_v10  ;;  %2400 = vmatprep.mubr.msk.f32.mxu1 %vm205_vm4, %v2853_v24 }
 0x34b   :  { %2401 = vmatmul.mubr.msk.f32.vlgmr.msra.gmra.mrb[14].mxu1 %vm205_vm4, %v2850_v23 }
 0x34c   :  { %2403 = vmatprep.mubr.msk.f32.mxu1 %vm205_vm4, %v2867_v32 }
 0x34f   :  { %2404 = vmatmul.mubr.msk.f32.gmra.mrb[16].mxu1 %vm205_vm4, %v2878_v37 }
 0x350   :  { %2406 = vmatprep.mubr.msk.f32.mxu1 %vm205_vm4, %v2887_v42 }
 0x353   :  { %2407 = vmatmul.mubr.msk.f32.gmra.mrb[18].mxu1 %vm205_vm4, %v2896_v47 }
 0x354   :  { %2426 = vmatprep.mubr.msk.f32.mxu1 %vm205_vm4, %v2853_v24  ;;  %v752_v24 = vld [vmem:[%s3171_s11] sm:$0xff] }
 0x355   :  { %v2550_v20 = vpack.c.bf16 %v753_v19, %v752_v24 }
 0x357   :  { %2551 = vmatprep.subr.bf16.mxu0 %v2550_v20 }
 0x41a   :  { %v2381_v0 = vpop.f32.mrb[12].mxu1 }
 0x41b   :  { %v651_v12 = vpop.f32.mrb[13].mxu1 }
 0x41c   :  { %2386 = vmatprep.mubr.msk.f32.mxu0 %vm205_vm4, %v651_v12 }
 0x41d   :  { %2387 = vmatmul.mubr.msk.f32.vlgmr.msra.gmra.mrb[6].mxu0 %vm205_vm4, %v2381_v0 }
 0x41e   :  { %v3004_v13 = vpop.f32.mrb[14].mxu1  ;;  %2553 = vmatpush3.bf16.msra.mxu0 %v2550_v20 }
 0x41f   :  { %v3006_v14 = vpop.f32.mrb[15].mxu1  ;;  %2559 = vmatprep.subr.bf16.mxu0 %v2554_v10 }
 0x422   :  { %v3008_v15 = vpop.f32.mrb[16].mxu1 }
 0x423   :  { %v3010_v16 = vpop.f32.mrb[17].mxu1 }
 0x426   :  { %v3012_v17 = vpop.f32.mrb[18].mxu1 }
 0x427   :  { %v3014_v18 = vpop.f32.mrb[19].mxu1 }
 0x4f0   :  { %v2388_v22 = vpop.f32.mrb[6].mxu0 }
 0x4f1   :  { %v747_v25 = vadd.f32 %v2388_v22, %v2142_v21  ;;  %v741_v29 = vpop.f32.mrb[7].mxu0 }
 0x4f2   :  { %v742_v30 = vadd.f32 %v2142_v21, %v741_v29 }
 0x4f4   :  { %2642 = vtanh.f32 %v742_v30 }
 0x4f5   :  { %2644 = vtanh.f32 %v747_v25 }
 0x4fe   :  { %v2643_v31 = vpop.eup %2642 }
 0x4ff   :  { %v2645_v34 = vpop.eup %2644  ;;  %2393 = vmatprep.mubr.msk.f32.mxu0 %vm205_vm4, %v2643_v31 }
 0x500   :  { %2394 = vmatmul.mubr.msk.f32.vlgmr.msra.gmra.mrb[8].mxu0 %vm205_vm4, %v2645_v34 }
 0x501   :  { %2561 = vmatpush3.bf16.msra.mxu0 %v2554_v10  ;;  %2413 = vmatprep.mubr.msk.f32.mxu0 %vm205_vm4, %v2861_v28  ;;  %v2145_v28 = vld [vmem:[%s3175_s12] ss:$0 sm:$0xff] }
 0x502   :  { %2435 = vmatprep.subr.msk.mxu0 %vm1166_vm2, %v1146_v35 }
 0x504   :  { %2414 = vmatmul.mubr.msk.f32.vlgmr.msra.gmra.mrb[10].mxu0 %vm205_vm4, %v2858_v27  ;;  %v1145_v27 = vld [vmem:[%s3174_s13] sm:$0xf] }
 0x505   :  { %2416 = vmatprep.mubr.msk.f32.mxu0 %vm205_vm4, %v2872_v33  ;;  %2436 = vmatpush3.msk.msra.mxu0 %vm1166_vm2, %v1146_v35 }
 0x506   :  { %2446 = vmatprep.subr.msk.mxu0 %vm1166_vm2, %v1145_v27 }
 0x508   :  { %2417 = vmatmul.mubr.msk.f32.gmra.mrb[12].mxu0 %vm205_vm4, %v2881_v38 }
 0x509   :  { %2419 = vmatprep.mubr.msk.f32.mxu0 %vm205_vm4, %v2890_v43 }
 0x50c   :  { %2420 = vmatmul.mubr.msk.f32.gmra.mrb[14].mxu0 %vm205_vm4, %v2899_v48 }
 0x5d3   :  { %v2395_v33 = vpop.f32.mrb[8].mxu0 }
 0x5d4   :  { %v839_v38 = vadd.f32 %v2395_v33, %v2145_v28  ;;  %v833_v43 = vpop.f32.mrb[9].mxu0  ;;  %v1831_v33 = vld [vmem:[%s3181_s21 + $0x8] sm:$0xff] }
 0x5d5   :  { %v834_v48 = vadd.f32 %v2145_v28, %v833_v43  ;;  %v1830_v28 = vld [vmem:[%s3181_s21] sm:$0xff] }
 0x5d7   :  { %v2562_v36 = vpack.c.bf16 %v839_v38, %v834_v48  ;;  %v2415_v39 = vpop.f32.mrb[10].mxu0 }
 0x5d8   :  { %v1021_v40 = vpop.f32.mrb[11].mxu0 }
 0x5d9   :  { %2563 = vmatprep.subr.bf16.mxu1 %v2562_v36  ;;  %2437 = vmatprep.mubr.msk.f32.mxu0 %vm1147_vm3, %v1021_v40 }
 0x5da   :  { %2565 = vmatpush3.bf16.msra.mxu1 %v2562_v36  ;;  %2438 = vmatmul.mubr.msk.f32.vlgmr.msra.gmra.mrb[16].mxu0 %vm1147_vm3, %v2415_v39  ;;  %v2582_v36 = vpack.c.bf16 %v1831_v33, %v1830_v28  ;;  %v1829_v39 = vld [vmem:[%s3182_s20] sm:$0xf] }
 0x5db   :  { %v2418_v44 = vpop.f32.mrb[12].mxu0  ;;  %2447 = vmatpush3.msk.msra.mxu0 %vm1166_vm2, %v1145_v27 }
 0x5dc   :  { %v1031_v45 = vpop.f32.mrb[13].mxu0  ;;  %2457 = vmatprep.subr.msk.mxu0 %vm346_vm13, %v1381_v41 }
 0x5dd   :  { %2427 = vmatmul.mubr.msk.f32.vlgmr.msra.gmra.mrb[20].mxu1 %vm205_vm4, %v2850_v23  ;;  %2440 = vmatprep.mubr.msk.f32.mxu0 %vm1147_vm3, %v1031_v45  ;;  %v1486_v23 = vld [vmem:[%s3177_s16] sm:$0xff] }
 0x5de   :  { %2429 = vmatprep.mubr.msk.f32.mxu1 %vm205_vm4, %v2867_v32  ;;  %2441 = vmatmul.mubr.msk.f32.gmra.mrb[18].mxu0 %vm1147_vm3, %v2418_v44  ;;  %v2009_v44 = vld [vmem:[%s3183_s23 + $0x8] sm:$0xff] }
 0x5df   :  { %v2421_v46 = vpop.f32.mrb[14].mxu0 }
 0x5e0   :  { %v1041_v49 = vpop.f32.mrb[15].mxu0 }
 0x5e1   :  { %2430 = vmatmul.mubr.msk.f32.gmra.mrb[22].mxu1 %vm205_vm4, %v2878_v37  ;;  %2443 = vmatprep.mubr.msk.f32.mxu0 %vm1147_vm3, %v1041_v49 }
 0x5e2   :  { %2432 = vmatprep.mubr.msk.f32.mxu1 %vm205_vm4, %v2887_v42  ;;  %2444 = vmatmul.mubr.msk.f32.gmra.mrb[20].mxu0 %vm1147_vm3, %v2421_v46  ;;  %v2208_v46 = vld [vmem:[%s3184_s22] ss:$0 sm:$0xff] }
 0x5e3   :  { %2448 = vmatprep.mubr.msk.f32.mxu0 %vm1147_vm3, %v3006_v14 }
 0x5e5   :  { %2433 = vmatmul.mubr.msk.f32.gmra.mrb[24].mxu1 %vm205_vm4, %v2896_v47 }
 0x5e6   :  { %2449 = vmatmul.mubr.msk.f32.vlgmr.msra.gmra.mrb[16].mxu0 %vm1147_vm3, %v3004_v13  ;;  %v2194_v13 = vld [vmem:[%s3180_s19] ss:$0 sm:$0xff] }
 0x5e7   :  { %2451 = vmatprep.mubr.msk.f32.mxu0 %vm1147_vm3, %v3010_v16  ;;  %2458 = vmatpush3.msk.msra.mxu0 %vm346_vm13, %v1381_v41 }
 0x5e8   :  { %2468 = vmatprep.subr.mxu0 %v1486_v23 }
 0x5ea   :  { %2452 = vmatmul.mubr.msk.f32.gmra.mrb[18].mxu0 %vm1147_vm3, %v3008_v15 }
 0x5eb   :  { %2454 = vmatprep.mubr.msk.f32.mxu0 %vm1147_vm3, %v3014_v18 }
 0x5ee   :  { %2455 = vmatmul.mubr.msk.f32.gmra.mrb[20].mxu0 %vm1147_vm3, %v3012_v17 }
 0x5ef   :  { %2459 = vmatprep.mubr.msk.f32.mxu0 %vm327_vm14, %v2910_v51 }
 0x5f2   :  { %2460 = vmatmul.mubr.msk.f32.vlgmr.msra.gmra.mrb[16].mxu0 %vm327_vm14, %v2908_v50 }
 0x5f3   :  { %2462 = vmatprep.mubr.msk.f32.mxu0 %vm327_vm14, %v2918_v53  ;;  %2469 = vmatpush3.msra.mxu0 %v1486_v23  ;;  %v1627_v53 = vld [vmem:[%s3178_s18 + $0x8] sm:$0xff] }
 0x5f6   :  { %2463 = vmatmul.mubr.msk.f32.gmra.mrb[18].mxu0 %vm327_vm14, %v2916_v52  ;;  %v1626_v52 = vld [vmem:[%s3178_s18] sm:$0xff] }
 0x5f7   :  { %2465 = vmatprep.mubr.msk.f32.mxu0 %vm327_vm14, %v2926_v55  ;;  %v2193_v55 = vld [vmem:[%s3179_s17] ss:$0 sm:$0xff] }
 0x5fa   :  { %2466 = vmatmul.mubr.msk.f32.gmra.mrb[20].mxu0 %vm327_vm14, %v2924_v54  ;;  %v2566_v54 = vpack.c.bf16 %v1627_v53, %v1626_v52 }
 0x5fc   :  { %2567 = vmatprep.subr.bf16.mxu1 %v2566_v54 }
 0x5fd   :  { %2569 = vmatpush3.bf16.msra.mxu1 %v2566_v54 }
 0x6b0   :  { %v2428_v32 = vpop.f32.mrb[20].mxu1 }
 0x6b1   :  { %v1116_v37 = vpop.f32.mrb[21].mxu1 }
 0x6b2   :  { %2470 = vmatprep.mubr.msk.f32.mxu0 %vm1487_vm5, %v1116_v37 }
 0x6b3   :  { %2471 = vmatmul.mubr.msk.f32.vlgmr.msra.gmra.mrb[16].mxu0 %vm1487_vm5, %v2428_v32 }
 0x6b4   :  { %v2431_v42 = vpop.f32.mrb[22].mxu1 }
 0x6b5   :  { %v1126_v47 = vpop.f32.mrb[23].mxu1 }
 0x6b6   :  { %2473 = vmatprep.mubr.msk.f32.mxu0 %vm1487_vm5, %v1126_v47 }
 0x6b7   :  { %2474 = vmatmul.mubr.msk.f32.gmra.mrb[18].mxu0 %vm1487_vm5, %v2431_v42  ;;  %v2209_v42 = vld [vmem:[%s3185_s24] ss:$0 sm:$0xff] }
 0x6b8   :  { %v2434_v50 = vpop.f32.mrb[24].mxu1 }
 0x6b9   :  { %v1136_v51 = vpop.f32.mrb[25].mxu1 }
 0x6ba   :  { %2476 = vmatprep.mubr.msk.f32.mxu0 %vm1487_vm5, %v1136_v51 }
 0x6bb   :  { %2477 = vmatmul.mubr.msk.f32.gmra.mrb[20].mxu0 %vm1487_vm5, %v2434_v50 }
 0x786   :  { %v2472_v56 = vpop.f32.mrb[16].mxu0 }
 0x787   :  { %v1615_v57 = vadd.f32 %v2472_v56, %v2193_v55  ;;  %v1572_v58 = vpop.f32.mrb[17].mxu0 }
 0x788   :  { %v1614_v59 = vadd.f32 %v2193_v55, %v1572_v58 }
 0x78a   :  { %2646 = vtanh.f32 %v1614_v59  ;;  %v2475_v60 = vpop.f32.mrb[18].mxu0 }
 0x78b   :  { %2648 = vtanh.f32 %v1615_v57  ;;  %v1617_v61 = vadd.f32 %v2475_v60, %v2193_v55  ;;  %v1582_v62 = vpop.f32.mrb[19].mxu0 }
 0x78c   :  { %v1616_v63 = vadd.f32 %v2193_v55, %v1582_v62 }
 0x78e   :  { %2650 = vtanh.f32 %v1616_v63  ;;  %v2478_v1 = vpop.f32.mrb[20].mxu0 }
 0x78f   :  { %2652 = vtanh.f32 %v1617_v61  ;;  %v1619_v2 = vadd.f32 %v2478_v1, %v2193_v55  ;;  %v1592_v3 = vpop.f32.mrb[21].mxu0 }
 0x790   :  { %v1618_v4 = vadd.f32 %v2193_v55, %v1592_v3 }
 0x792   :  { %2654 = vtanh.f32 %v1618_v4 }
 0x793   :  { %2656 = vtanh.f32 %v1619_v2 }
 0x794   :  { %v2647_v7 = vpop.eup %2646 }
 0x795   :  { %v2649_v8 = vpop.eup %2648  ;;  %2483 = vmatprep.mubr.msk.f32.mxu1 %vm205_vm4, %v2647_v7 }
 0x796   :  { %2484 = vmatmul.mubr.msk.f32.vlgmr.msra.gmra.mrb[26].mxu1 %vm205_vm4, %v2649_v8 }
 0x798   :  { %v2651_v9 = vpop.eup %2650 }
 0x799   :  { %v2653_v10 = vpop.eup %2652  ;;  %2486 = vmatprep.mubr.msk.f32.mxu1 %vm205_vm4, %v2651_v9 }
 0x79a   :  { %2487 = vmatmul.mubr.msk.f32.gmra.mrb[28].mxu1 %vm205_vm4, %v2653_v10 }
 0x79c   :  { %v2655_v0 = vpop.eup %2654 }
 0x79d   :  { %v2657_v12 = vpop.eup %2656  ;;  %2489 = vmatprep.mubr.msk.f32.mxu1 %vm205_vm4, %v2655_v0 }
 0x79e   :  { %2490 = vmatmul.mubr.msk.f32.gmra.mrb[30].mxu1 %vm205_vm4, %v2657_v12 }
 0x79f   :  { %2504 = vmatprep.mubr.msk.f32.mxu1 %vm186_vm15, %v2958_v26 }
 0x869   :  { %v2485_v14 = vpop.f32.mrb[26].mxu1 }
 0x86a   :  { %v1725_v15 = vadd.f32 %v2485_v14, %v2194_v13  ;;  %v1719_v16 = vpop.f32.mrb[27].mxu1 }
 0x86b   :  { %v1720_v17 = vadd.f32 %v2194_v13, %v1719_v16 }
 0x86c   :  { %2658 = vtanh.f32 %v1725_v15 }
 0x86d   :  { %2660 = vtanh.f32 %v1720_v17  ;;  %v2488_v18 = vpop.f32.mrb[28].mxu1 }
 0x86e   :  { %v1735_v24 = vadd.f32 %v2488_v18, %v2194_v13  ;;  %v1729_v19 = vpop.f32.mrb[29].mxu1 }
 0x86f   :  { %v1730_v20 = vadd.f32 %v2194_v13, %v1729_v19 }
 0x870   :  { %2662 = vtanh.f32 %v1735_v24 }
 0x871   :  { %2664 = vtanh.f32 %v1730_v20  ;;  %v2491_v21 = vpop.f32.mrb[30].mxu1 }
 0x872   :  { %v1745_v22 = vadd.f32 %v2491_v21, %v2194_v13  ;;  %v1739_v25 = vpop.f32.mrb[31].mxu1 }
 0x873   :  { %v1740_v26 = vadd.f32 %v2194_v13, %v1739_v25 }
 0x874   :  { %2666 = vtanh.f32 %v1745_v22 }
 0x875   :  { %2668 = vtanh.f32 %v1740_v26 }
 0x876   :  { %v2659_v29 = vpop.eup %2658 }
 0x877   :  { %v2661_v30 = vpop.eup %2660 }
 0x878   :  { %v2570_v31 = vpack.c.bf16 %v2659_v29, %v2661_v30 }
 0x87a   :  { %v2663_v34 = vpop.eup %2662  ;;  %2571 = vmatprep.subr.bf16.mxu1 %v2570_v31 }
 0x87b   :  { %v2665_v35 = vpop.eup %2664  ;;  %2573 = vmatpush3.bf16.msra.mxu1 %v2570_v31 }
 0x87c   :  { %v2574_v27 = vpack.c.bf16 %v2663_v34, %v2665_v35 }
 0x87e   :  { %v2667_v38 = vpop.eup %2666  ;;  %2575 = vmatprep.subr.bf16.mxu1 %v2574_v27 }
 0x87f   :  { %v2669_v43 = vpop.eup %2668  ;;  %2577 = vmatpush3.bf16.msra.mxu1 %v2574_v27 }
 0x880   :  { %v2578_v48 = vpack.c.bf16 %v2667_v38, %v2669_v43 }
 0x882   :  { %2579 = vmatprep.subr.bf16.mxu1 %v2578_v48 }
 0x883   :  { %2581 = vmatpush3.bf16.msra.mxu1 %v2578_v48 }
 0x884   :  { %2583 = vmatprep.subr.bf16.mxu1 %v2582_v36 }
 0x886   :  { %2505 = vmatmul.mubr.msk.f32.vlgmr.msra.gmra.mrb[32].mxu1 %vm186_vm15, %v2984_v11  ;;  %v2008_v11 = vld [vmem:[%s3183_s23] sm:$0xff] }
 0x887   :  { %2585 = vmatpush3.bf16.msra.mxu1 %v2582_v36  ;;  %v2586_v45 = vpack.c.bf16 %v2009_v44, %v2008_v11 }
 0x888   :  { %2514 = vmatprep.subr.msk.mxu1 %vm1166_vm2, %v1829_v39 }
 0x959   :  { %v2506_v40 = vpop.f32.mrb[32].mxu1 }
 0x95a   :  { %v1820_v41 = vpop.f32.mrb[33].mxu1 }
 0x95b   :  { %2511 = vmatprep.mubr.msk.f32.mxu1 %vm205_vm4, %v1820_v41 }
 0x95c   :  { %2512 = vmatmul.mubr.msk.f32.vlgmr.msra.gmra.mrb[34].mxu1 %vm205_vm4, %v2506_v40 }
 0x95d   :  { %2515 = vmatpush3.msk.msra.mxu1 %vm1166_vm2, %v1829_v39  ;;  %2516 = vmatprep.mubr.msk.f32.mxu1 %vm1147_vm3, %v2974_v5 }
 0x95e   :  { %2587 = vmatprep.subr.bf16.mxu1 %v2586_v45 }
 0x964   :  { %2517 = vmatmul.mubr.msk.f32.vlgmr.msra.gmra.mrb[34].mxu1 %vm1147_vm3, %v2979_v6 }
 0x965   :  { %2589 = vmatpush3.bf16.msra.mxu1 %v2586_v45 }
 0xa37   :  { %v2518_v49 = vpop.f32.mrb[34].mxu1 }
 0xa38   :  { %v2005_v5 = vadd.f32 %v2518_v49, %v2208_v46  ;;  %v1988_v23 = vpop.f32.mrb[35].mxu1 }
 0xa39   :  { %v2004_v32 = vadd.f32 %v2208_v46, %v1988_v23 }
 0xa3b   :  { %2670 = vtanh.f32 %v2004_v32 }
 0xa3c   :  { %2672 = vtanh.f32 %v2005_v5 }
 0xa45   :  { %v2671_v6 = vpop.eup %2670 }
 0xa46   :  { %v2673_v37 = vpop.eup %2672  ;;  %2523 = vmatprep.mubr.msk.f32.mxu1 %vm205_vm4, %v2671_v6 }
 0xa47   :  { %2524 = vmatmul.mubr.msk.f32.vlgmr.msra.gmra.mrb[36].mxu1 %vm205_vm4, %v2673_v37 }
 0xb1a   :  { %v2525_v47 = vpop.f32.mrb[36].mxu1 }
 0xb1b   :  { %v2095_v50 = vadd.f32 %v2525_v47, %v2209_v42  ;;  %v2089_v51 = vpop.f32.mrb[37].mxu1 }
 0xb1c   :  { %v2090_v52 = vadd.f32 %v2209_v42, %v2089_v51 }
 0xb1d   :  { %2099 = vst.msk [vmem:[%s3186_s25 + $0x8] sm:$0xff] %vm1147_vm3, %v2095_v50 }
 0xb1e   :  { %2098 = vst.msk [vmem:[%s3186_s25] sm:$0xff] %vm1147_vm3, %v2090_v52 }

</bundles_post_ra>
